<compile_context>
chip_gen: v7x
topology: tpu7x:2x2x1
jax: 0.10.0
libtpu: 0.0.40
codegen_flags: <defaults>
</compile_context>

<pallas_src>
import math

import jax
import jax.numpy as jnp
from jax import lax
from jax.experimental import pallas as pl
from jax.experimental.pallas import tpu as pltpu


def dense_gelu_kernel(x_ref, w_ref, b_ref, o_ref, acc_ref):
    k = pl.program_id(2)

    @pl.when(k == 0)
    def _():
        acc_ref[...] = jnp.zeros_like(acc_ref)

    # x_tile: (tm, tk), w_tile: (tn, tk)  ->  contract last dims -> (tm, tn)
    acc_ref[...] += lax.dot_general(
        x_ref[...], w_ref[...],
        dimension_numbers=(((1,), (1,)), ((), ())),
        preferred_element_type=jnp.float32)

    @pl.when(k == pl.num_programs(2) - 1)
    def _():
        # Bias add + exact GELU (nn.GELU default) only once, in the finalize step.
        y = acc_ref[...] + b_ref[...]
        inv_sqrt2 = jnp.float32(1.0 / math.sqrt(2.0))
        g = 0.5 * y * (1.0 + lax.erf(y * inv_sqrt2))
        o_ref[...] = g.astype(o_ref.dtype)


def _pick_tile(dim, target, align):
    """Tile for a non-reduction axis: full dim if small, else an aligned multiple."""
    if dim <= target:
        return dim
    return max((target // align) * align, align)


def _pick_k_tile(K, target):
    """Reduction-axis tile: must divide K exactly (no padded garbage in the sum)."""
    if K <= target:
        return K
    t = (target // 128) * 128
    for cand in range(t, 0, -128):
        if K % cand == 0:
            return cand
    return K


def intermediate_layer(hidden_states, weight, bias, *,
                       tm_target=512, tn_target=512, tk_target=1024):
    """hidden_states: (B, S, H). weight: (H//2, H) (PyTorch layout). bias: (H//2,)."""
    B, S, H = hidden_states.shape
    N, K = weight.shape
    assert K == H, "weight must be (intermediate, hidden)"
    M = B * S

    x2d = hidden_states.reshape(M, H)
    b2d = bias.reshape(1, N)

    # Per-call tile selection.  f32, tm=tn=512, tk=1024 double-buffered is ~11.5 MiB,
    # which fits the 32 MiB scoped VMEM budget on every generation (incl. v7x).
    tm = _pick_tile(M, tm_target, 8)
    tn = _pick_tile(N, tn_target, 128)
    tk = _pick_k_tile(K, tk_target)

    grid = (pl.cdiv(M, tm), pl.cdiv(N, tn), K // tk)

    out2d = pl.pallas_call(
        dense_gelu_kernel,
        out_shape=jax.ShapeDtypeStruct((M, N), hidden_states.dtype),
        grid_spec=pltpu.PrefetchScalarGridSpec(
            num_scalar_prefetch=0,
            grid=grid,
            in_specs=[
                # activations: (tm, tk) tile at (i, k)
                pl.BlockSpec((tm, tk), lambda i, j, k: (i, k)),
                # weight kept in PyTorch (N, K) layout: (tn, tk) tile at (j, k)
                pl.BlockSpec((tn, tk), lambda i, j, k: (j, k)),
                # bias: (1, tn) tile indexed only by j -> VMEM-resident across i, k
                pl.BlockSpec((1, tn), lambda i, j, k: (0, j)),
            ],
            out_specs=pl.BlockSpec((tm, tn), lambda i, j, k: (i, j)),
            scratch_shapes=[pltpu.VMEM((tm, tn), jnp.float32)],
        ),
        compiler_params=pltpu.CompilerParams(
            dimension_semantics=("parallel", "parallel", "arbitrary"),
            vmem_limit_bytes=32 * 1024 * 1024,
        ),
        cost_estimate=pl.CostEstimate(
            flops=2 * M * N * K,
            transcendentals=M * N,
            bytes_accessed=(M * K + N * K + N + M * N) * 4,
        ),
    )(x2d, weight, b2d)

    return out2d.reshape(B, S, N)


if __name__ == "__main__":
    # Small shapes consistent with the module: batch=2, seq=8, hidden=32
    B, S, H = 2, 8, 32
    N = H // 2

    key = jax.random.PRNGKey(0)
    k_x, k_w, k_b = jax.random.split(key, 3)

    hidden_states = jax.random.normal(k_x, (B, S, H), dtype=jnp.float32)
    # Deterministic "Linear" parameters (PyTorch weight layout: (out, in))
    bound = 1.0 / math.sqrt(H)
    weight = jax.random.uniform(k_w, (N, H), minval=-bound, maxval=bound,
                                dtype=jnp.float32)
    bias = jax.random.uniform(k_b, (N,), minval=-bound, maxval=bound,
                              dtype=jnp.float32)

    out = intermediate_layer(hidden_states, weight, bias)
    out = jax.block_until_ready(out)

    # Sanity check against plain-JAX reference (exact erf-based GELU).
    ref = hidden_states @ weight.T + bias
    ref = 0.5 * ref * (1.0 + lax.erf(ref / jnp.sqrt(2.0)))
    assert out.shape == (B, S, N)
    assert jnp.allclose(out, ref, atol=1e-5, rtol=1e-5)

    print("KERNEL_OK")
</pallas_src>

<mosaic_0001>
module attributes {stable_mosaic.version = 11 : i64} {
  func.func @dense_gelu_kernel(%arg0: i32, %arg1: i32, %arg2: i32, %arg3: memref<16x32xf32, #tpu.memory_space<vmem>>, %arg4: memref<16x32xf32, #tpu.memory_space<vmem>>, %arg5: memref<1x16xf32, #tpu.memory_space<vmem>>, %arg6: memref<16x16xf32, #tpu.memory_space<vmem>>, %arg7: memref<16x16xf32, #tpu.memory_space<vmem>>) attributes {dimension_semantics = [#tpu.dimension_semantics<parallel>, #tpu.dimension_semantics<parallel>, #tpu.dimension_semantics<arbitrary>], iteration_bounds = array<i64: 1, 1, 1>, scalar_prefetch = 0 : i64, scratch_operands = 1 : i64, tpu.core_type = #tpu.core_type<tc>, window_params = [{transform_indices = @transform_0, window_bounds = array<i64: 16, 32>}, {transform_indices = @transform_1, window_bounds = array<i64: 16, 32>}, {transform_indices = @transform_2, window_bounds = array<i64: 1, 16>}, {transform_indices = @transform_3, window_bounds = array<i64: 16, 16>}]} {
    %c0_i32 = arith.constant 0 : i32
    %0 = arith.cmpi eq, %arg2, %c0_i32 : i32
    %1 = arith.extui %0 : i1 to i32
    %c0_i32_0 = arith.constant 0 : i32
    %2 = arith.cmpi ne, %1, %c0_i32_0 : i32
    scf.if %2 {
      %cst_10 = arith.constant 0.000000e+00 : f32
      %12 = vector.broadcast %cst_10 : f32 to vector<16x16xf32>
      %c0_11 = arith.constant 0 : index
      %c0_12 = arith.constant 0 : index
      %13 = vector.load %arg7[%c0_11, %c0_12] : memref<16x16xf32, #tpu.memory_space<vmem>>, vector<16x16xf32>
      tpu.vector_store %arg7[%c0_11, %c0_12], %12 {strides = array<i32>} : memref<16x16xf32, #tpu.memory_space<vmem>>, vector<16x16xf32>,
    } else {
    }
    %c0 = arith.constant 0 : index
    %c0_1 = arith.constant 0 : index
    %3 = vector.load %arg7[%c0, %c0_1] : memref<16x16xf32, #tpu.memory_space<vmem>>, vector<16x16xf32>
    %c0_2 = arith.constant 0 : index
    %c0_3 = arith.constant 0 : index
    %4 = vector.load %arg3[%c0_2, %c0_3] : memref<16x32xf32, #tpu.memory_space<vmem>>, vector<16x32xf32>
    %c0_4 = arith.constant 0 : index
    %c0_5 = arith.constant 0 : index
    %5 = vector.load %arg4[%c0_4, %c0_5] : memref<16x32xf32, #tpu.memory_space<vmem>>, vector<16x32xf32>
    %cst = arith.constant dense<0.000000e+00> : vector<16x16xf32>
    %6 = tpu.matmul %4, %5, %cst {dimension_numbers = #tpu.dot_dimension_numbers<[1], [1], [0], [0], [0, 0, 1, 0], [], []>} : vector<16x32xf32>, vector<16x32xf32>, vector<16x16xf32> -> vector<16x16xf32>
    %7 = arith.addf %3, %6 : vector<16x16xf32>
    %c0_6 = arith.constant 0 : index
    %c0_7 = arith.constant 0 : index
    %8 = vector.load %arg7[%c0_6, %c0_7] : memref<16x16xf32, #tpu.memory_space<vmem>>, vector<16x16xf32>
    tpu.vector_store %arg7[%c0_6, %c0_7], %7 {strides = array<i32>} : memref<16x16xf32, #tpu.memory_space<vmem>>, vector<16x16xf32>,
    %c0_i32_8 = arith.constant 0 : i32
    %9 = arith.cmpi eq, %arg2, %c0_i32_8 : i32
    %10 = arith.extui %9 : i1 to i32
    %c0_i32_9 = arith.constant 0 : i32
    %11 = arith.cmpi ne, %10, %c0_i32_9 : i32
    scf.if %11 {
      %c0_10 = arith.constant 0 : index
      %c0_11 = arith.constant 0 : index
      %12 = vector.load %arg7[%c0_10, %c0_11] : memref<16x16xf32, #tpu.memory_space<vmem>>, vector<16x16xf32>
      %c0_12 = arith.constant 0 : index
      %c0_13 = arith.constant 0 : index
      %13 = vector.load %arg5[%c0_12, %c0_13] : memref<1x16xf32, #tpu.memory_space<vmem>>, vector<1x16xf32>
      %14 = vector.broadcast %13 : vector<1x16xf32> to vector<16x16xf32>
      %15 = arith.addf %12, %14 : vector<16x16xf32>
      %cst_14 = arith.constant 5.000000e-01 : f32
      %16 = vector.broadcast %cst_14 : f32 to vector<16x16xf32>
      %17 = arith.mulf %16, %15 : vector<16x16xf32>
      %cst_15 = arith.constant 0.707106769 : f32
      %18 = vector.broadcast %cst_15 : f32 to vector<16x16xf32>
      %19 = arith.mulf %15, %18 : vector<16x16xf32>
      %20 = math.erf %19 : vector<16x16xf32>
      %cst_16 = arith.constant 1.000000e+00 : f32
      %21 = vector.broadcast %cst_16 : f32 to vector<16x16xf32>
      %22 = arith.addf %21, %20 : vector<16x16xf32>
      %23 = arith.mulf %17, %22 : vector<16x16xf32>
      %c0_17 = arith.constant 0 : index
      %c0_18 = arith.constant 0 : index
      %24 = vector.load %arg6[%c0_17, %c0_18] : memref<16x16xf32, #tpu.memory_space<vmem>>, vector<16x16xf32>
      tpu.vector_store %arg6[%c0_17, %c0_18], %23 {strides = array<i32>} : memref<16x16xf32, #tpu.memory_space<vmem>>, vector<16x16xf32>,
    } else {
    }
    return
  }
  func.func @transform_0(%arg0: i32, %arg1: i32, %arg2: i32) -> (i32, i32) {
    %c0_i32 = arith.constant 0 : i32
    return %arg0, %arg2 : i32, i32
  }
  func.func @transform_1(%arg0: i32, %arg1: i32, %arg2: i32) -> (i32, i32) {
    %c0_i32 = arith.constant 0 : i32
    return %arg1, %arg2 : i32, i32
  }
  func.func @transform_2(%arg0: i32, %arg1: i32, %arg2: i32) -> (i32, i32) {
    %c0_i32 = arith.constant 0 : i32
    %c0_i32_0 = arith.constant 0 : i32
    return %c0_i32, %arg1 : i32, i32
  }
  func.func @transform_3(%arg0: i32, %arg1: i32, %arg2: i32) -> (i32, i32) {
    %c0_i32 = arith.constant 0 : i32
    return %arg0, %arg1 : i32, i32
  }
}

</mosaic_0001>

<bundles_post_ra>
// kernel: tpu_custom_call.1
= control target key start
LH: loop header
LB: loop body
LE: loop exit
PB: predicated region body
PF: predicated region fallthrough
CT: control target
= control target key end

     0   :  { %8 = vsyncpa [#allocation4], 0  ;;  %s377_s0 = inlined_call_operand.hbm [shape: f32[16,32], index: 0, kind: input, shape index: {}]   ;;  %s378_s1 = inlined_call_operand.hbm [shape: f32[16,32], index: 1, kind: input, shape index: {}]   ;;  %s379_s2 = inlined_call_operand.vmem [shape: f32[1,16], index: 2, kind: input, shape index: {}]   ;;  %s380_s3 = inlined_call_operand.hbm [shape: f32[16,16], index: 3, kind: output, shape index: {}]  }
   0x1   :  { %9 = vsyncpa [#allocation7], 0 }
   0x2   :  { %10 = vsyncpa [#allocation5], 0  ;;  %s297_s12 = smov [#allocation3]   ;;  %s225_s16 = scalar_lea.hbm %s377_s0, 256 }
   0x3   :  { %s16_s13 = sshll.u32 %s297_s12, 4  ;;  %p226_p0 = scmp.ne.s32.totalorder %s377_s0, %s225_s16  ;;  %s17_s13 = int_to_ptr.vmem [resolvable:$true] %s16_s13 }
   0x4   :  { %p229_p1 = scmp.lt.u32.totalorder %s225_s16, %s377_s0 }
   0x6   :  { %p231_p2 = pnand %p229_p1, %p226_p0 }
   0x8   :  { %234 = shalt.err (!%p231_p2)
}
   0x9   :  { %s235_s21 = scalar_lea.vmem %s17_s13, 256  ;;  %p240_p4 = scmp.lt.s32.totalorder %s17_s13, %s17_s13 }
   0xa   :  { %p236_p3 = scmp.ne.s32.totalorder %s17_s13, %s235_s21  ;;  %p241_p5 = scmp.lt.s32.totalorder %s235_s21, %s235_s21 }
   0xc   :  { %p242_p6 = por %p241_p5, %p240_p4 }
   0xe   :  { %p243_p7 = pnand %p242_p6, %p236_p3 }
  0x10   :  { %246 = shalt.err (!%p243_p7)
}
  0x11   :  { %s298_s22 = smov 128   ;;  %s299_s23 = smov 8  }
  0x12   :  { %22 = dma.hbm_to_vmem [thread:$0]  %s377_s0, 256, %s17_s13, [#allocation4], %s298_s22, %s298_s22, %s299_s23  }
  0x13   :  { %s300_s26 = smov [#allocation6]   ;;  %s247_s30 = scalar_lea.hbm %s378_s1, 256 }
  0x14   :  { %s28_s27 = sshll.u32 %s300_s26, 4  ;;  %p248_p8 = scmp.ne.s32.totalorder %s378_s1, %s247_s30  ;;  %s29_s27 = int_to_ptr.vmem [resolvable:$true] %s28_s27 }
  0x15   :  { %p251_p9 = scmp.lt.u32.totalorder %s247_s30, %s378_s1 }
  0x17   :  { %p253_p10 = pnand %p251_p9, %p248_p8 }
  0x19   :  { %256 = shalt.err (!%p253_p10)
}
  0x1a   :  { %s257_s8 = scalar_lea.vmem %s29_s27, 256  ;;  %p262_p12 = scmp.lt.s32.totalorder %s29_s27, %s29_s27 }
  0x1b   :  { %p258_p11 = scmp.ne.s32.totalorder %s29_s27, %s257_s8  ;;  %p263_p13 = scmp.lt.s32.totalorder %s257_s8, %s257_s8 }
  0x1d   :  { %p264_p0 = por %p263_p13, %p262_p12 }
  0x1f   :  { %p265_p1 = pnand %p264_p0, %p258_p11 }
  0x21   :  { %268 = shalt.err (!%p265_p1)
}
  0x22   :  { %34 = dma.hbm_to_vmem [thread:$0]  %s378_s1, 256, %s29_s27, [#allocation7], %s298_s22, %s298_s22, %s299_s23  }
  0x23   :  { %291 = dma.done.wait [#allocation4], 256  }
  0x24   :  { %292 = vsyncadd [#allocation4], 4294967040 }
  0x25   :  { %293 = dma.done.wait [#allocation7], 256  }
  0x26   :  { %294 = vsyncadd [#allocation7], 4294967040  ;;  %vm47_vm0 = vcmask 130048   ;;  %v301_v0 = vmov 0.0   ;;  %vm56_vm1 = vcmask 261120   ;;  %v54_v1 = vld [vmem:[#allocation6] sm:$0xff] }
  0x27   :  { %49 = vst.msk [vmem:[#allocation2 + $0x8] sm:$0xff] %vm47_vm0, %v301_v0  ;;  %48 = vst.msk [vmem:[#allocation2] sm:$0xff] %vm47_vm0, %v301_v0  ;;  %v55_v2 = vld [vmem:[#allocation6 + $0x8] sm:$0xff]  ;;  %v52_v3 = vld [vmem:[#allocation3] sm:$0xff]  ;;  %s302_s11 = smov [#allocation8]  }
  0x28   :  { %vm210_vm2 = vmpackc.low %vm56_vm1, %vm56_vm1  ;;  %v209_v4 = vpack.c.bf16 %v55_v2, %v54_v1  ;;  %206 = vmatprep.mubr.msk.f32.mxu0 %vm56_vm1, %v52_v3  ;;  %v53_v5 = vld [vmem:[#allocation3 + $0x8] sm:$0xff]  ;;  %v197_v12 = vld [vmem:[%s379_s2] ss:$0 sm:$0xff]  ;;  %s180_s12 = sshll.u32 %s302_s11, 4  ;;  %s181_s12 = int_to_ptr.vmem [resolvable:$true] %s180_s12 }
  0x29   :  { %s269_s2 = scalar_lea.vmem %s181_s12, 256  ;;  %p274_p3 = scmp.lt.s32.totalorder %s181_s12, %s181_s12 }
  0x2a   :  { %211 = vmatprep.subr.msk.bf16.mxu0 %vm210_vm2, %v209_v4  ;;  %p270_p2 = scmp.ne.s32.totalorder %s181_s12, %s269_s2  ;;  %p275_p4 = scmp.lt.s32.totalorder %s269_s2, %s269_s2 }
  0x2b   :  { %214 = vmatpush3.bf16.xpose.msk.msra.mxu0 %vm210_vm2, %v209_v4 }
  0x2c   :  { %p276_p5 = por %p275_p4, %p274_p3 }
  0x2e   :  { %v51_v6 = vld [vmem:[#allocation2 + $0x8] sm:$0xff]  ;;  %v50_v7 = vld [vmem:[#allocation2] sm:$0xff]  ;;  %p277_p6 = pnand %p276_p5, %p270_p2 }
  0x32   :  { %207 = vmatmul.mubr.msk.f32.vlgmr.msra.gmra.mrb[0].mxu0 %vm56_vm1, %v53_v5 }
 0x105   :  { %v208_v8 = vpop.f32.mrb[0].mxu0 }
 0x106   :  { %v145_v9 = vadd.f32 %v208_v8, %v51_v6  ;;  %v135_v10 = vpop.f32.mrb[1].mxu0 }
 0x107   :  { %v144_v11 = vadd.f32 %v135_v10, %v50_v7 }
 0x108   :  { %148 = vst.msk [vmem:[#allocation2 + $0x8] sm:$0xff] %vm47_vm0, %v145_v9 }
 0x109   :  { %147 = vst.msk [vmem:[#allocation2] sm:$0xff] %vm47_vm0, %v144_v11 }
 0x10f   :  { %v153_v13 = vld [vmem:[#allocation2 + $0x8] sm:$0xff] }
 0x110   :  { %v152_v14 = vld [vmem:[#allocation2] sm:$0xff]  ;;  %v162_v15 = vadd.f32 %v197_v12, %v153_v13 }
 0x111   :  { %v161_v16 = vadd.f32 %v197_v12, %v152_v14 }
 0x112   :  { %v166_v17 = vmul.f32 0.70710677, %v162_v15  ;;  %v164_v21 = vmul.f32 0.5, %v162_v15 }
 0x113   :  { %v165_v18 = vmul.f32 0.70710677, %v161_v16  ;;  %v163_v23 = vmul.f32 0.5, %v161_v16 }
 0x114   :  { %221 = verf.f32 %v166_v17 }
 0x115   :  { %223 = verf.f32 %v165_v18 }
 0x11e   :  { %v222_v19 = vpop.eup %221 }
 0x11f   :  { %v224_v20 = vpop.eup %223  ;;  %v170_v22 = vadd.f32 1.0, %v222_v19 }
 0x120   :  { %v169_v24 = vadd.f32 1.0, %v224_v20 }
 0x121   :  { %v172_v25 = vmul.f32 %v170_v22, %v164_v21 }
 0x122   :  { %v171_v26 = vmul.f32 %v169_v24, %v163_v23 }
 0x123   :  { %174 = vst.msk [vmem:[#allocation8 + $0x8] sm:$0xff] %vm47_vm0, %v172_v25 }
 0x124   :  { %173 = vst.msk [vmem:[#allocation8] sm:$0xff] %vm47_vm0, %v171_v26 }
 0x125   :  { %280 = shalt.err (!%p277_p6)
}
 0x126   :  { %s281_s15 = scalar_lea.hbm %s380_s3, 256 }
 0x127   :  { %p282_p7 = scmp.ne.s32.totalorder %s380_s3, %s281_s15  ;;  %p285_p8 = scmp.lt.u32.totalorder %s281_s15, %s380_s3 }
 0x129   :  { %p287_p9 = pnand %p285_p8, %p282_p7 }
 0x12b   :  { %290 = shalt.err (!%p287_p9)
}
 0x12c   :  { %186 = dma.vmem_to_hbm [thread:$0]  %s181_s12, 256, %s380_s3, [#allocation5], %s298_s22, %s298_s22, %s299_s23  }
 0x12d   :  { %295 = dma.done.wait [#allocation5], 256  }
 0x12e   :  { %296 = vsyncadd [#allocation5], 4294967040 }
 0x12f   :  { %190 = vsyncpa [#allocation4], 1 }
 0x130   :  { %191 = vsyncpa [#allocation7], 1 }
 0x131   :  { %192 = vsyncpa [#allocation5], 1 }

</bundles_post_ra>
